<compile_context>
chip_gen: v6e
topology: v6e:2x2x1
jax: 0.10.0
libtpu: 0.0.40
codegen_flags: <defaults>
</compile_context>

<pallas_src>
import math
from functools import partial

import jax
import jax.numpy as jnp
from jax.experimental import pallas as pl
from jax.experimental.pallas import tpu as pltpu

EPS = 1e-5  # F.layer_norm default eps


def _round_up(x, m):
    return ((x + m - 1) // m) * m


def _ffn_kernel(x_ref, w1_ref, w2_ref, o_ref, *, d_real, inner_real):
    x = x_ref[...]  # [tm, Dp] f32; columns >= d_real are zero-padded

    # --- LayerNorm(dim): statistics over the first d_real columns only.
    # Padded columns are exactly zero, so sums over the padded tile equal sums
    # over the real columns; divide by the real dim.  var = E[x^2] - mu^2.
    inv_d = jnp.float32(1.0 / d_real)
    mu = jnp.sum(x, axis=-1, keepdims=True) * inv_d
    ex2 = jnp.sum(x * x, axis=-1, keepdims=True) * inv_d
    var = ex2 - mu * mu
    xn = (x - mu) * jax.lax.rsqrt(var + EPS)
    # (padded xn columns are nonzero (-mu*rsqrt) but multiply zero weight rows)

    # --- Fused Linear(dim, inner*2, bias=False): one MXU call, bf16 in / f32 acc.
    h = jnp.dot(xn.astype(jnp.bfloat16), w1_ref[...],
                preferred_element_type=jnp.float32)      # [tm, 2*inner_p]
    inner_p = h.shape[-1] // 2
    a = h[:, :inner_p]                                   # value half
    g = h[:, inner_p:]                                   # gate half

    # --- GEGLU with exact (erf) GELU to match F.gelu default.
    inv_sqrt2 = jnp.float32(1.0 / math.sqrt(2.0))
    u = a * (0.5 * g * (1.0 + jax.lax.erf(g * inv_sqrt2)))   # [tm, inner_p]
    # padded inner columns of u are exactly zero (zero weight columns)

    # --- LayerNorm(inner), same padded-statistics trick.
    inv_i = jnp.float32(1.0 / inner_real)
    mu2 = jnp.sum(u, axis=-1, keepdims=True) * inv_i
    eu2 = jnp.sum(u * u, axis=-1, keepdims=True) * inv_i
    var2 = eu2 - mu2 * mu2
    un = (u - mu2) * jax.lax.rsqrt(var2 + EPS)

    # --- Dropout(p=0.0) is a no-op.
    # --- Linear(inner, dim, bias=False), bf16 in / f32 acc.
    o_ref[...] = jnp.dot(un.astype(jnp.bfloat16), w2_ref[...],
                         preferred_element_type=jnp.float32)


def feedforward_pallas(feats, coors, params):
    """Returns (net(feats), 0) exactly like the PyTorch module (coors unused)."""
    B, N, D = feats.shape
    M = B * N
    inner = params["w1a"].shape[1]

    # Lane-dense padding of the feature dims.
    Dp = _round_up(D, 128)
    inner_p = _round_up(inner, 128)

    # Row tile: big enough to amortize per-step overhead, small enough for
    # v7x's 64 MiB VMEM (tiles here are only a few hundred KiB anyway).
    tm = 512 if M >= 512 else _round_up(M, 8)
    Mp = _round_up(M, tm)

    # Activations: flatten, f32, zero-pad rows and feature columns.
    x2d = feats.reshape(M, D).astype(jnp.float32)
    x2d = jnp.pad(x2d, ((0, Mp - M), (0, Dp - D)))

    # Fold LayerNorm gammas into the weights, pad, fuse GEGLU halves, cast bf16.
    g1 = params["gamma1"].astype(jnp.float32)[:, None]          # [D, 1]
    g2 = params["gamma2"].astype(jnp.float32)[:, None]          # [inner, 1]
    w1a_f = jnp.pad(params["w1a"] * g1, ((0, Dp - D), (0, inner_p - inner)))
    w1b_f = jnp.pad(params["w1b"] * g1, ((0, Dp - D), (0, inner_p - inner)))
    w1_fused = jnp.concatenate([w1a_f, w1b_f], axis=1).astype(jnp.bfloat16)  # [Dp, 2*inner_p]
    w2_f = jnp.pad(params["w2"] * g2, ((0, inner_p - inner), (0, Dp - D)))
    w2_fused = w2_f.astype(jnp.bfloat16)                                     # [inner_p, Dp]

    grid = (Mp // tm,)
    out2d = pl.pallas_call(
        partial(_ffn_kernel, d_real=D, inner_real=inner),
        out_shape=jax.ShapeDtypeStruct((Mp, Dp), jnp.float32),
        grid=grid,
        in_specs=[
            pl.BlockSpec((tm, Dp), lambda i: (i, 0)),             # streamed rows
            pl.BlockSpec((Dp, 2 * inner_p), lambda i: (0, 0)),    # resident weight
            pl.BlockSpec((inner_p, Dp), lambda i: (0, 0)),        # resident weight
        ],
        out_specs=pl.BlockSpec((tm, Dp), lambda i: (i, 0)),
        compiler_params=pltpu.CompilerParams(
            dimension_semantics=("parallel",),       # shards row tiles on v7x's 2 TCs
            vmem_limit_bytes=48 * 1024 * 1024,       # ~25% headroom on v7x's 64 MiB
        ),
    )(x2d, w1_fused, w2_fused)

    out = out2d[:M, :D].reshape(B, N, D)
    return out, 0


def init_params(key, dim, mult=4):
    inner_dim = int(dim * mult * 2 / 3)
    k1, k2, k3, k4 = jax.random.split(key, 4)
    # nn.Linear default init: U(-1/sqrt(fan_in), 1/sqrt(fan_in)); weight is [out, in].
    bound1 = 1.0 / math.sqrt(dim)
    w1 = jax.random.uniform(k1, (inner_dim * 2, dim), jnp.float32, -bound1, bound1)
    bound2 = 1.0 / math.sqrt(inner_dim)
    w2 = jax.random.uniform(k2, (dim, inner_dim), jnp.float32, -bound2, bound2)
    return {
        # non-trivial gammas so the gamma-folding path is actually exercised
        "gamma1": 1.0 + 0.1 * jax.random.normal(k3, (dim,), jnp.float32),
        "gamma2": 1.0 + 0.1 * jax.random.normal(k4, (inner_dim,), jnp.float32),
        # pre-transposed / GEGLU-split so the kernel does plain x @ W
        "w1a": jnp.transpose(w1[:inner_dim, :]),   # [dim, inner]  (value half)
        "w1b": jnp.transpose(w1[inner_dim:, :]),   # [dim, inner]  (gate half)
        "w2": jnp.transpose(w2),                   # [inner, dim]
    }


def _reference(feats, params):
    # Pure-JAX f32 reference (PyTorch-module semantics).
    x = feats.astype(jnp.float32)
    mu = jnp.mean(x, -1, keepdims=True)
    var = jnp.mean((x - mu) ** 2, -1, keepdims=True)
    xn = (x - mu) * jax.lax.rsqrt(var + EPS) * params["gamma1"]
    a = xn @ params["w1a"]
    g = xn @ params["w1b"]
    u = a * (0.5 * g * (1.0 + jax.lax.erf(g / jnp.sqrt(2.0))))
    mu2 = jnp.mean(u, -1, keepdims=True)
    var2 = jnp.mean((u - mu2) ** 2, -1, keepdims=True)
    un = (u - mu2) * jax.lax.rsqrt(var2 + EPS) * params["gamma2"]
    return un @ params["w2"]


if __name__ == "__main__":
    key = jax.random.PRNGKey(0)
    kx, kc, kp = jax.random.split(key, 3)

    B, N, dim = 2, 8, 48          # dim=48 -> inner_dim = int(48*4*2/3) = 128
    feats = jax.random.normal(kx, (B, N, dim), jnp.float32)
    coors = jax.random.normal(kc, (B, N, 3), jnp.float32)  # unused by forward

    params = init_params(kp, dim)

    ffn = jax.jit(feedforward_pallas)
    out, zero = ffn(feats, coors, params)
    out = jax.block_until_ready(out)

    ref = _reference(feats, params)
    assert out.shape == (B, N, dim)
    assert zero == 0
    # bf16 matmul operands (f32 accumulation) -> loosened tolerance vs f32 reference.
    assert jnp.allclose(out, ref, atol=8e-2, rtol=8e-2), (
        "mismatch vs reference: max abs err = %r" % float(jnp.max(jnp.abs(out - ref))))

    print("KERNEL_OK")
</pallas_src>

<mosaic_0001>
module attributes {stable_mosaic.version = 11 : i64} {
  func.func @_ffn_kernel(%arg0: i32, %arg1: memref<16x128xf32, #tpu.memory_space<vmem>>, %arg2: memref<128x256xbf16, #tpu.memory_space<vmem>>, %arg3: memref<128x128xbf16, #tpu.memory_space<vmem>>, %arg4: memref<16x128xf32, #tpu.memory_space<vmem>>) attributes {dimension_semantics = [#tpu.dimension_semantics<parallel>], iteration_bounds = array<i64: 1>, scalar_prefetch = 0 : i64, scratch_operands = 0 : i64, tpu.core_type = #tpu.core_type<tc>, window_params = [{transform_indices = @transform_0, window_bounds = array<i64: 16, 128>}, {pipeline_mode = #tpu.pipeline_mode<synchronous>, transform_indices = @transform_1, window_bounds = array<i64: 128, 256>}, {pipeline_mode = #tpu.pipeline_mode<synchronous>, transform_indices = @transform_2, window_bounds = array<i64: 128, 128>}, {transform_indices = @transform_3, window_bounds = array<i64: 16, 128>}]} {
    %c0 = arith.constant 0 : index
    %c0_0 = arith.constant 0 : index
    %0 = vector.load %arg1[%c0, %c0_0] : memref<16x128xf32, #tpu.memory_space<vmem>>, vector<16x128xf32>
    %cst = arith.constant dense<0.000000e+00> : vector<16xf32>
    %1 = vector.multi_reduction <add>, %0, %cst [1] : vector<16x128xf32> to vector<16xf32>
    %2 = vector.shape_cast %1 : vector<16xf32> to vector<16x1xf32>
    %cst_1 = arith.constant 0.020833334 : f32
    %3 = vector.broadcast %cst_1 : f32 to vector<16x1xf32>
    %4 = arith.mulf %2, %3 : vector<16x1xf32>
    %5 = arith.mulf %0, %0 : vector<16x128xf32>
    %cst_2 = arith.constant dense<0.000000e+00> : vector<16xf32>
    %6 = vector.multi_reduction <add>, %5, %cst_2 [1] : vector<16x128xf32> to vector<16xf32>
    %7 = vector.shape_cast %6 : vector<16xf32> to vector<16x1xf32>
    %cst_3 = arith.constant 0.020833334 : f32
    %8 = vector.broadcast %cst_3 : f32 to vector<16x1xf32>
    %9 = arith.mulf %7, %8 : vector<16x1xf32>
    %10 = arith.mulf %4, %4 : vector<16x1xf32>
    %11 = arith.subf %9, %10 : vector<16x1xf32>
    %12 = vector.broadcast %4 : vector<16x1xf32> to vector<16x128xf32>
    %13 = arith.subf %0, %12 : vector<16x128xf32>
    %cst_4 = arith.constant 9.99999974E-6 : f32
    %14 = vector.broadcast %cst_4 : f32 to vector<16x1xf32>
    %15 = arith.addf %11, %14 : vector<16x1xf32>
    %16 = math.rsqrt %15 : vector<16x1xf32>
    %17 = vector.broadcast %16 : vector<16x1xf32> to vector<16x128xf32>
    %18 = arith.mulf %13, %17 : vector<16x128xf32>
    %19 = arith.truncf %18 : vector<16x128xf32> to vector<16x128xbf16>
    %c0_5 = arith.constant 0 : index
    %c0_6 = arith.constant 0 : index
    %20 = vector.load %arg2[%c0_5, %c0_6] : memref<128x256xbf16, #tpu.memory_space<vmem>>, vector<128x256xbf16>
    %cst_7 = arith.constant dense<0.000000e+00> : vector<16x256xf32>
    %21 = tpu.matmul %19, %20, %cst_7 {dimension_numbers = #tpu.dot_dimension_numbers<[1], [0], [0], [1], [0, 0, 1, 1], [], []>} : vector<16x128xbf16>, vector<128x256xbf16>, vector<16x256xf32> -> vector<16x256xf32>
    %22 = vector.extract_strided_slice %21 {offsets = [0, 0], sizes = [16, 128], strides = [1, 1]} : vector<16x256xf32> to vector<16x128xf32>
    %23 = vector.extract_strided_slice %21 {offsets = [0, 128], sizes = [16, 128], strides = [1, 1]} : vector<16x256xf32> to vector<16x128xf32>
    %cst_8 = arith.constant 5.000000e-01 : f32
    %24 = vector.broadcast %cst_8 : f32 to vector<16x128xf32>
    %25 = arith.mulf %24, %23 : vector<16x128xf32>
    %cst_9 = arith.constant 0.707106769 : f32
    %26 = vector.broadcast %cst_9 : f32 to vector<16x128xf32>
    %27 = arith.mulf %23, %26 : vector<16x128xf32>
    %28 = math.erf %27 : vector<16x128xf32>
    %cst_10 = arith.constant 1.000000e+00 : f32
    %29 = vector.broadcast %cst_10 : f32 to vector<16x128xf32>
    %30 = arith.addf %29, %28 : vector<16x128xf32>
    %31 = arith.mulf %25, %30 : vector<16x128xf32>
    %32 = arith.mulf %22, %31 : vector<16x128xf32>
    %cst_11 = arith.constant dense<0.000000e+00> : vector<16xf32>
    %33 = vector.multi_reduction <add>, %32, %cst_11 [1] : vector<16x128xf32> to vector<16xf32>
    %34 = vector.shape_cast %33 : vector<16xf32> to vector<16x1xf32>
    %cst_12 = arith.constant 7.812500e-03 : f32
    %35 = vector.broadcast %cst_12 : f32 to vector<16x1xf32>
    %36 = arith.mulf %34, %35 : vector<16x1xf32>
    %37 = arith.mulf %32, %32 : vector<16x128xf32>
    %cst_13 = arith.constant dense<0.000000e+00> : vector<16xf32>
    %38 = vector.multi_reduction <add>, %37, %cst_13 [1] : vector<16x128xf32> to vector<16xf32>
    %39 = vector.shape_cast %38 : vector<16xf32> to vector<16x1xf32>
    %cst_14 = arith.constant 7.812500e-03 : f32
    %40 = vector.broadcast %cst_14 : f32 to vector<16x1xf32>
    %41 = arith.mulf %39, %40 : vector<16x1xf32>
    %42 = arith.mulf %36, %36 : vector<16x1xf32>
    %43 = arith.subf %41, %42 : vector<16x1xf32>
    %44 = vector.broadcast %36 : vector<16x1xf32> to vector<16x128xf32>
    %45 = arith.subf %32, %44 : vector<16x128xf32>
    %cst_15 = arith.constant 9.99999974E-6 : f32
    %46 = vector.broadcast %cst_15 : f32 to vector<16x1xf32>
    %47 = arith.addf %43, %46 : vector<16x1xf32>
    %48 = math.rsqrt %47 : vector<16x1xf32>
    %49 = vector.broadcast %48 : vector<16x1xf32> to vector<16x128xf32>
    %50 = arith.mulf %45, %49 : vector<16x128xf32>
    %51 = arith.truncf %50 : vector<16x128xf32> to vector<16x128xbf16>
    %c0_16 = arith.constant 0 : index
    %c0_17 = arith.constant 0 : index
    %52 = vector.load %arg3[%c0_16, %c0_17] : memref<128x128xbf16, #tpu.memory_space<vmem>>, vector<128x128xbf16>
    %cst_18 = arith.constant dense<0.000000e+00> : vector<16x128xf32>
    %53 = tpu.matmul %51, %52, %cst_18 {dimension_numbers = #tpu.dot_dimension_numbers<[1], [0], [0], [1], [0, 0, 1, 1], [], []>} : vector<16x128xbf16>, vector<128x128xbf16>, vector<16x128xf32> -> vector<16x128xf32>
    %c0_19 = arith.constant 0 : index
    %c0_20 = arith.constant 0 : index
    %54 = vector.load %arg4[%c0_19, %c0_20] : memref<16x128xf32, #tpu.memory_space<vmem>>, vector<16x128xf32>
    tpu.vector_store %arg4[%c0_19, %c0_20], %53 {strides = array<i32>} : memref<16x128xf32, #tpu.memory_space<vmem>>, vector<16x128xf32>,
    return
  }
  func.func @transform_0(%arg0: i32) -> (i32, i32) {
    %c0_i32 = arith.constant 0 : i32
    %c0_i32_0 = arith.constant 0 : i32
    return %arg0, %c0_i32 : i32, i32
  }
  func.func @transform_1(%arg0: i32) -> (i32, i32) {
    %c0_i32 = arith.constant 0 : i32
    %c0_i32_0 = arith.constant 0 : i32
    %c0_i32_1 = arith.constant 0 : i32
    return %c0_i32, %c0_i32_0 : i32, i32
  }
  func.func @transform_2(%arg0: i32) -> (i32, i32) {
    %c0_i32 = arith.constant 0 : i32
    %c0_i32_0 = arith.constant 0 : i32
    %c0_i32_1 = arith.constant 0 : i32
    return %c0_i32, %c0_i32_0 : i32, i32
  }
  func.func @transform_3(%arg0: i32) -> (i32, i32) {
    %c0_i32 = arith.constant 0 : i32
    %c0_i32_0 = arith.constant 0 : i32
    return %arg0, %c0_i32 : i32, i32
  }
}

</mosaic_0001>

<bundles_post_ra>
// kernel: feedforward_pallas.1
= control target key start
LH: loop header
LB: loop body
LE: loop exit
PB: predicated region body
PF: predicated region fallthrough
CT: control target
= control target key end

     0   :  { %v433_v16 = vmov 0   ;;  %v434_v61 = vmov 0.0   ;;  %vm435_vm0 = vmmov 0   ;;  %s552_s0 = inlined_call_operand.vmem [shape: f32[16,128], index: 0, kind: input, shape index: {}]   ;;  %s553_s1 = inlined_call_operand.vmem [shape: bf16[128,256], index: 1, kind: input, shape index: {}]   ;;  %s554_s2 = inlined_call_operand.vmem [shape: bf16[128,128], index: 2, kind: input, shape index: {}]   ;;  %s555_s3 = inlined_call_operand.vmem [shape: f32[16,128], index: 3, kind: output, shape index: {}]  }
   0x1   :  { %v459_v0 = vld [vmem:[%s552_s0] sm:$0xff]  ;;  %v464_v1 = vld [vmem:[%s552_s0 + $0x8] sm:$0xff]  ;;  %v389_v3 = vld [vmem:[%s553_s1 + $0x74] ss:$8 sps:$4 sm:$0xff]   ;;  %172 = vmatprep.mubr.bf16.mxu0 %v433_v16  ;;  %366 = vmatprep.subr.bf16.mxu1 %v434_v61 }
   0x2   :  { %17 = vadd.xlane.f32.xlu0 %v459_v0  ;;  %v23_v2 = vmul.f32 %v459_v0, %v459_v0  ;;  %v391_v4 = vld [vmem:[%s553_s1 + $0x70] ss:$8 sps:$4 sm:$0xff]   ;;  %v24_v5 = vmul.f32 %v464_v1, %v464_v1  ;;  %140 = vmatprep.subr.bf16.mxu0 %v389_v3  ;;  %v392_v6 = vld [vmem:[%s553_s1 + $0x64] ss:$8 sps:$4 sm:$0xff]   ;;  %v394_v7 = vld [vmem:[%s553_s1 + $0x60] ss:$8 sps:$4 sm:$0xff]  }
   0x3   :  { %141 = vmatpush1.bf16.msra.mxu0 %v391_v4  ;;  %v395_v8 = vld [vmem:[%s553_s1 + $0x54] ss:$8 sps:$4 sm:$0xff]   ;;  %v397_v9 = vld [vmem:[%s553_s1 + $0x50] ss:$8 sps:$4 sm:$0xff]   ;;  %v398_v10 = vld [vmem:[%s553_s1 + $0x44] ss:$8 sps:$4 sm:$0xff]   ;;  %382 = vmatprep.mubr.msk.bf16.mxu1 %vm435_vm0, %v434_v61 }
   0x4   :  { %25 = vadd.xlane.f32.xlu1 %v23_v2  ;;  %142 = vmatprep.subr.bf16.mxu0 %v392_v6  ;;  %v400_v11 = vld [vmem:[%s553_s1 + $0x40] ss:$8 sps:$4 sm:$0xff]   ;;  %v401_v12 = vld [vmem:[%s553_s1 + $0x34] ss:$8 sps:$4 sm:$0xff]   ;;  %v403_v13 = vld [vmem:[%s553_s1 + $0x30] ss:$8 sps:$4 sm:$0xff]  }
   0x5   :  { %v404_v14 = vld [vmem:[%s553_s1 + $0x24] ss:$8 sps:$4 sm:$0xff]   ;;  %v406_v15 = vld [vmem:[%s553_s1 + $0x20] ss:$8 sps:$4 sm:$0xff]   ;;  %v407_v17 = vld [vmem:[%s553_s1 + $0x14] ss:$8 sps:$4 sm:$0xff]  }
   0x6   :  { %19 = vadd.xlane.f32.xlu0 %v464_v1  ;;  %v409_v18 = vld [vmem:[%s553_s1 + $0x10] ss:$8 sps:$4 sm:$0xff]   ;;  %v410_v19 = vld [vmem:[%s553_s1 + $0x4] ss:$8 sps:$4 sm:$0xff]   ;;  %v412_v20 = vld [vmem:[%s553_s1] ss:$8 sps:$4 sm:$0xff]  }
   0x7   :  { %143 = vmatpush1.bf16.msra.mxu0 %v394_v7  ;;  %v413_v60 = vld [vmem:[%s554_s2 + $0x38] sm:$0xff]   ;;  %v414_v62 = vld [vmem:[%s554_s2 + $0x30] sm:$0xff]   ;;  %v415_v63 = vld [vmem:[%s554_s2 + $0x28] sm:$0xff]  }
   0x8   :  { %27 = vadd.xlane.f32.xlu1 %v24_v5  ;;  %144 = vmatprep.subr.bf16.mxu0 %v395_v8  ;;  %v418_v2 = vld [vmem:[%s554_s2 + $0x10] sm:$0xff]   ;;  %v419_v3 = vld [vmem:[%s554_s2 + $0x8] sm:$0xff]   ;;  %v420_v4 = vld [vmem:[%s554_s2] sm:$0xff]  }
   0x9   :  { %367 = vmatpush3.bf16.msra.mxu1 %v413_v60 }
   0xa   :  { %368 = vmatprep.subr.bf16.mxu1 %v434_v61 }
   0xb   :  { %145 = vmatpush1.bf16.msra.mxu0 %v397_v9 }
   0xc   :  { %146 = vmatprep.subr.bf16.mxu0 %v398_v10 }
   0xd   :  { %369 = vmatpush3.bf16.msra.mxu1 %v414_v62 }
   0xe   :  { %370 = vmatprep.subr.bf16.mxu1 %v434_v61 }
   0xf   :  { %147 = vmatpush1.bf16.msra.mxu0 %v400_v11 }
  0x10   :  { %148 = vmatprep.subr.bf16.mxu0 %v401_v12 }
  0x11   :  { %371 = vmatpush3.bf16.msra.mxu1 %v415_v63 }
  0x12   :  { %372 = vmatprep.subr.bf16.mxu1 %v434_v61 }
  0x13   :  { %149 = vmatpush1.bf16.msra.mxu0 %v403_v13 }
  0x14   :  { %150 = vmatprep.subr.bf16.mxu0 %v404_v14 }
  0x17   :  { %151 = vmatpush1.bf16.msra.mxu0 %v406_v15 }
  0x18   :  { %152 = vmatprep.subr.bf16.mxu0 %v407_v17 }
  0x1b   :  { %153 = vmatpush1.bf16.msra.mxu0 %v409_v18 }
  0x1c   :  { %154 = vmatprep.subr.bf16.mxu0 %v410_v19 }
  0x1f   :  { %155 = vmatpush1.bf16.msra.mxu0 %v412_v20 }
  0x8b   :  { %v18_v21 = vpop.xlane.xlu0 %17 }
  0x8c   :  { %v21_v22 = vmul.f32 0.020833334, %v18_v21 }
  0x8d   :  { %v26_v23 = vpop.xlane.xlu1 %25 }
  0x8e   :  { %v31_v24 = vmul.f32 %v21_v22, %v21_v22  ;;  %v29_v25 = vmul.f32 0.020833334, %v26_v23  ;;  %v35_v36 = vsub.f32 %v459_v0, %v21_v22  ;;  %v416_v0 = vld [vmem:[%s554_s2 + $0x20] sm:$0xff]  }
  0x8f   :  { %v20_v26 = vpop.xlane.xlu0 %19  ;;  %373 = vmatpush3.bf16.msra.mxu1 %v416_v0 }
  0x90   :  { %v33_v27 = vsub.f32 %v29_v25, %v31_v24  ;;  %v22_v28 = vmul.f32 0.020833334, %v20_v26  ;;  %374 = vmatprep.subr.bf16.mxu1 %v434_v61 }
  0x91   :  { %v28_v29 = vpop.xlane.xlu1 %27 }
  0x92   :  { %v37_v30 = vadd.f32 1e-05, %v33_v27  ;;  %v32_v31 = vmul.f32 %v22_v28, %v22_v28  ;;  %v30_v32 = vmul.f32 0.020833334, %v28_v29  ;;  %v36_v37 = vsub.f32 %v464_v1, %v22_v28  ;;  %v417_v1 = vld [vmem:[%s554_s2 + $0x18] sm:$0xff]  }
  0x93   :  { %375 = vmatpush3.bf16.msra.mxu1 %v417_v1 }
  0x94   :  { %v34_v33 = vsub.f32 %v30_v32, %v32_v31  ;;  %421 = vrsqrt.f32 %v37_v30  ;;  %376 = vmatprep.subr.bf16.mxu1 %v434_v61 }
  0x96   :  { %v38_v34 = vadd.f32 1e-05, %v34_v33 }
  0x97   :  { %377 = vmatpush3.bf16.msra.mxu1 %v418_v2 }
  0x98   :  { %423 = vrsqrt.f32 %v38_v34  ;;  %378 = vmatprep.subr.bf16.mxu1 %v434_v61 }
  0x9b   :  { %379 = vmatpush3.bf16.msra.mxu1 %v419_v3 }
  0x9c   :  { %380 = vmatprep.subr.bf16.mxu1 %v434_v61 }
  0x9f   :  { %381 = vmatpush3.bf16.msra.mxu1 %v420_v4 }
  0xa1   :  { %v422_v35 = vpop.eup %421 }
  0xa2   :  { %v41_v39 = vmul.f32 %v422_v35, %v35_v36 }
  0xa5   :  { %v424_v38 = vpop.eup %423 }
  0xa6   :  { %v42_v40 = vmul.f32 %v424_v38, %v36_v37 }
  0xa8   :  { %v43_v41 = vpack.c.bf16 %v42_v40, %v41_v39 }
  0xaa   :  { %173 = vmatmul.mubr.bf16.vlgmr.msra.gmra.mxu0 %v43_v41 }
 0x16a   :  { %v174_v42 = vpop.f32.mrf.mxu0 }
 0x16c   :  { %v176_v43 = vpop.f32.mrf.mxu0 }
 0x16d   :  { %v185_v44 = vmul.f32 0.70710677, %v176_v43  ;;  %v183_v49 = vmul.f32 0.5, %v176_v43 }
 0x16e   :  { %v178_v45 = vpop.f32.mrf.mxu0 }
 0x16f   :  { %425 = verf.f32 %v185_v44 }
 0x170   :  { %v180_v46 = vpop.f32.mrf.mxu0 }
 0x171   :  { %v186_v47 = vmul.f32 0.70710677, %v180_v46  ;;  %v184_v53 = vmul.f32 0.5, %v180_v46 }
 0x173   :  { %427 = verf.f32 %v186_v47 }
 0x17c   :  { %v426_v48 = vpop.eup %425 }
 0x17d   :  { %v189_v50 = vadd.f32 1.0, %v426_v48 }
 0x17f   :  { %v191_v51 = vmul.f32 %v189_v50, %v183_v49 }
 0x180   :  { %v428_v52 = vpop.eup %427 }
 0x181   :  { %v190_v54 = vadd.f32 1.0, %v428_v52  ;;  %v193_v55 = vmul.f32 %v191_v51, %v174_v42 }
 0x183   :  { %v192_v56 = vmul.f32 %v190_v54, %v184_v53  ;;  %195 = vadd.xlane.f32.xlu0 %v193_v55  ;;  %v201_v57 = vmul.f32 %v193_v55, %v193_v55 }
 0x185   :  { %v194_v58 = vmul.f32 %v192_v56, %v178_v45 }
 0x187   :  { %203 = vadd.xlane.f32.xlu0 %v201_v57  ;;  %197 = vadd.xlane.f32.xlu1 %v194_v58  ;;  %v202_v59 = vmul.f32 %v194_v58, %v194_v58 }
 0x18b   :  { %205 = vadd.xlane.f32.xlu1 %v202_v59 }
 0x20c   :  { %v196_v5 = vpop.xlane.xlu0 %195 }
 0x20d   :  { %v199_v6 = vmul.f32 0.0078125, %v196_v5 }
 0x20f   :  { %v209_v9 = vmul.f32 %v199_v6, %v199_v6  ;;  %v213_v20 = vsub.f32 %v193_v55, %v199_v6 }
 0x210   :  { %v204_v7 = vpop.xlane.xlu0 %203  ;;  %v198_v8 = vpop.xlane.xlu1 %197 }
 0x211   :  { %v207_v10 = vmul.f32 0.0078125, %v204_v7  ;;  %v200_v11 = vmul.f32 0.0078125, %v198_v8 }
 0x213   :  { %v211_v12 = vsub.f32 %v207_v10, %v209_v9  ;;  %v210_v15 = vmul.f32 %v200_v11, %v200_v11  ;;  %v214_v21 = vsub.f32 %v194_v58, %v200_v11 }
 0x214   :  { %v206_v13 = vpop.xlane.xlu1 %205 }
 0x215   :  { %v215_v14 = vadd.f32 1e-05, %v211_v12  ;;  %v208_v16 = vmul.f32 0.0078125, %v206_v13 }
 0x217   :  { %v212_v17 = vsub.f32 %v208_v16, %v210_v15  ;;  %429 = vrsqrt.f32 %v215_v14 }
 0x219   :  { %v216_v18 = vadd.f32 1e-05, %v212_v17 }
 0x21b   :  { %431 = vrsqrt.f32 %v216_v18 }
 0x224   :  { %v430_v19 = vpop.eup %429 }
 0x225   :  { %v219_v23 = vmul.f32 %v430_v19, %v213_v20 }
 0x228   :  { %v432_v22 = vpop.eup %431 }
 0x229   :  { %v220_v24 = vmul.f32 %v432_v22, %v214_v21 }
 0x22b   :  { %v221_v25 = vpack.c.bf16 %v220_v24, %v219_v23 }
 0x22d   :  { %383 = vmatmul.mubr.bf16.vlgmr.msra.gmra.mxu1 %v221_v25 }
 0x2ed   :  { %v320_v26 = vpop.f32.mrf.mxu1 }
 0x2ee   :  { %327 = vst [vmem:[%s555_s3] sm:$0xff] %v320_v26 }
 0x2ef   :  { %v384_v27 = vpop.f32.mrf.mxu1 }
 0x2f1   :  { %v323_v28 = vpop.f32.mrf.mxu1 }
 0x2f2   :  { %328 = vst [vmem:[%s555_s3 + $0x8] sm:$0xff] %v323_v28 }
 0x2f3   :  { %v385_v29 = vpop.f32.mrf.mxu1 }

</bundles_post_ra>
